<compile_context>
chip_gen: v7x
topology: tpu7x:2x2x1
jax: 0.10.0
libtpu: 0.0.40
codegen_flags: <defaults>
</compile_context>

<pallas_src>
import jax
import jax.numpy as jnp
from jax.experimental import pallas as pl
from jax.experimental.pallas import tpu as pltpu


TARGET_BLOCK_BYTES = 4 * 1024 * 1024   # 4 MiB blocks; 2 in + 2 out buffers = 16 MiB VMEM
VMEM_LIMIT_BYTES = 32 * 1024 * 1024    # raise v5e's 16 MiB default; matches v6e/v7x default
MIN_GRID_STEPS = 4                     # give the pipeline something to overlap
SMALL_N_BYPASS = 1 << 15               # < 32K elements: launch overhead dwarfs the work


def _square_kernel(x_ref, o_ref):
    x = x_ref[...]
    o_ref[...] = x * x


def _choose_lanes(n: int) -> int:
    """Widest lane count in {1024,512,256,128} that divides n (0 if none)."""
    for lanes in (1024, 512, 256, 128):
        if n % lanes == 0:
            return lanes
    return 0


def _choose_tile_rows(rows: int, lanes: int, itemsize: int) -> int:
    """Tile row count: dtype-aware sublane multiple, ~MIN_GRID_STEPS blocks, <=4 MiB."""
    sub = max(8, 32 // itemsize)  # sublane packing: 8 (f32/i32), 16 (bf16), 32 (i8/fp8)
    if rows < sub:
        return rows               # single block equal to full array dims (exempt rule)
    max_rows = max(sub, ((TARGET_BLOCK_BYTES // (lanes * itemsize)) // sub) * sub)
    want = -(-rows // MIN_GRID_STEPS)   # ceil: aim for >= MIN_GRID_STEPS grid steps
    want = -(-want // sub) * sub        # round up to the sublane multiple
    return max(sub, min(max_rows, want))


def _run_square_2d(x2d: jax.Array, tile_rows: int, donate_input: bool) -> jax.Array:
    rows, lanes = x2d.shape
    itemsize = x2d.dtype.itemsize
    grid = (pl.cdiv(rows, tile_rows),)   # partial last block handled (masked) by Pallas
    return pl.pallas_call(
        _square_kernel,
        out_shape=jax.ShapeDtypeStruct((rows, lanes), x2d.dtype),
        grid_spec=pltpu.PrefetchScalarGridSpec(
            num_scalar_prefetch=0,
            grid=grid,
            in_specs=[pl.BlockSpec((tile_rows, lanes), lambda i: (i, 0))],
            out_specs=pl.BlockSpec((tile_rows, lanes), lambda i: (i, 0)),
        ),
        compiler_params=pltpu.CompilerParams(
            # Independent grid steps; lets the runtime shard them across v7x's 2 TCs.
            dimension_semantics=("parallel",),
            vmem_limit_bytes=VMEM_LIMIT_BYTES,
        ),
        cost_estimate=pl.CostEstimate(
            flops=rows * lanes,
            transcendentals=0,
            bytes_accessed=2 * rows * lanes * itemsize,
        ),
        input_output_aliases=({0: 0} if donate_input else {}),
    )(x2d)


def square(t: jax.Array, *, force_pallas: bool = False,
           donate_input: bool = False) -> jax.Array:
    """Elementwise square via a Pallas TPU kernel. Matches torch.pow(t, 2)."""
    orig_shape = t.shape
    n = t.size

    if n == 0:
        return t * t

    # Tiny inputs: a plain fused XLA elementwise op is strictly faster.
    if not force_pallas and n < SMALL_N_BYPASS:
        return t * t

    itemsize = jnp.dtype(t.dtype).itemsize
    lanes = _choose_lanes(n)

    if lanes:
        # Zero-copy path: contiguous reshape (no pad, no slice, no extra HBM traffic).
        rows = n // lanes
        tile_rows = _choose_tile_rows(rows, lanes, itemsize)
        out = _run_square_2d(t.reshape(rows, lanes), tile_rows, donate_input)
        return out.reshape(orig_shape)

    # Ragged fallback (n not a multiple of 128): pad only to the next 128-lane
    # multiple, run with the same cdiv grid, slice the tail back off.
    # TODO(synk): replace with an in-kernel masked tail (scalar-prefetch n) to drop
    # the pad/slice copies entirely; rare shape class for this module.
    lanes = 128
    rows = -(-n // lanes)
    flat = jnp.pad(jnp.ravel(t), (0, rows * lanes - n))
    tile_rows = _choose_tile_rows(rows, lanes, itemsize)
    out2d = _run_square_2d(flat.reshape(rows, lanes), tile_rows, False)
    return out2d.reshape(-1)[:n].reshape(orig_shape)


if __name__ == "__main__":
    key = jax.random.PRNGKey(0)
    k1, k2, k3, k4 = jax.random.split(key, 4)

    # Primary test: small NCHW activation, as in the original module's usage.
    x = jax.random.normal(key, (2, 4, 16, 16), dtype=jnp.float32)
    y = square(x, force_pallas=True)        # force the Pallas path despite small size
    jax.block_until_ready(y)
    assert y.shape == x.shape and y.dtype == x.dtype
    assert jnp.array_equal(y, x * x)

    # Ragged shape (n % 128 != 0): exercises the minimal-pad fallback path.
    xr = jax.random.normal(k1, (3, 5, 7), dtype=jnp.float32)
    yr = square(xr, force_pallas=True)
    jax.block_until_ready(yr)
    assert jnp.array_equal(yr, xr * xr)

    # Aligned multi-block shape: no-pad path, 4-step pipelined parallel grid.
    xa = jax.random.normal(k2, (16, 16, 64, 64), dtype=jnp.float32)
    ya = square(xa, force_pallas=True)
    jax.block_until_ready(ya)
    assert jnp.array_equal(ya, xa * xa)

    # Aligned but non-divisible row count: exercises the cdiv grid's masked
    # partial last block (rows=104, tile=32 -> grid of 4, last block = 8 rows).
    xp = jax.random.normal(k3, (104, 1024), dtype=jnp.float32)
    yp = square(xp, force_pallas=True)
    jax.block_until_ready(yp)
    assert jnp.array_equal(yp, xp * xp)

    # bf16: dtype-aware sublane rounding (tile rows become a multiple of 16).
    xb = jax.random.normal(k4, (24, 1024), dtype=jnp.float32).astype(jnp.bfloat16)
    yb = square(xb, force_pallas=True)
    jax.block_until_ready(yb)
    assert jnp.allclose(yb.astype(jnp.float32), (xb * xb).astype(jnp.float32))

    print("KERNEL_OK")
</pallas_src>

<mosaic_0001>
module attributes {stable_mosaic.version = 11 : i64} {
  func.func @_square_kernel(%arg0: i32, %arg1: memref<2x1024xf32, #tpu.memory_space<vmem>>, %arg2: memref<2x1024xf32, #tpu.memory_space<vmem>>) attributes {dimension_semantics = [#tpu.dimension_semantics<parallel>], iteration_bounds = array<i64: 1>, scalar_prefetch = 0 : i64, scratch_operands = 0 : i64, tpu.core_type = #tpu.core_type<tc>, window_params = [{transform_indices = @transform_0, window_bounds = array<i64: 2, 1024>}, {transform_indices = @transform_1, window_bounds = array<i64: 2, 1024>}]} {
    %c0 = arith.constant 0 : index
    %c0_0 = arith.constant 0 : index
    %0 = vector.load %arg1[%c0, %c0_0] : memref<2x1024xf32, #tpu.memory_space<vmem>>, vector<2x1024xf32>
    %1 = arith.mulf %0, %0 : vector<2x1024xf32>
    %c0_1 = arith.constant 0 : index
    %c0_2 = arith.constant 0 : index
    %2 = vector.load %arg2[%c0_1, %c0_2] : memref<2x1024xf32, #tpu.memory_space<vmem>>, vector<2x1024xf32>
    tpu.vector_store %arg2[%c0_1, %c0_2], %1 {strides = array<i32>} : memref<2x1024xf32, #tpu.memory_space<vmem>>, vector<2x1024xf32>,
    return
  }
  func.func @transform_0(%arg0: i32) -> (i32, i32) {
    %c0_i32 = arith.constant 0 : i32
    %c0_i32_0 = arith.constant 0 : i32
    return %arg0, %c0_i32 : i32, i32
  }
  func.func @transform_1(%arg0: i32) -> (i32, i32) {
    %c0_i32 = arith.constant 0 : i32
    %c0_i32_0 = arith.constant 0 : i32
    return %arg0, %c0_i32 : i32, i32
  }
}

</mosaic_0001>

<bundles_post_ra>
// kernel: tpu_custom_call.1
= control target key start
LH: loop header
LB: loop body
LE: loop exit
PB: predicated region body
PF: predicated region fallthrough
CT: control target
= control target key end

     0   :  { %6 = vsyncpa [#allocation3], 0  ;;  %s128_s0 = inlined_call_operand.hbm [shape: f32[2,1024], index: 0, kind: input, shape index: {}]   ;;  %s129_s1 = inlined_call_operand.hbm [shape: f32[2,1024], index: 1, kind: output, shape index: {}]  }
   0x1   :  { %7 = vsyncpa [#allocation4], 0  ;;  %s92_s6 = smov [#allocation2]   ;;  %s44_s10 = scalar_lea.hbm %s128_s0, 256 }
   0x2   :  { %s14_s7 = sshll.u32 %s92_s6, 4  ;;  %p45_p0 = scmp.ne.s32.totalorder %s128_s0, %s44_s10  ;;  %s15_s7 = int_to_ptr.vmem [resolvable:$true] %s14_s7 }
   0x3   :  { %p48_p1 = scmp.lt.u32.totalorder %s44_s10, %s128_s0 }
   0x5   :  { %p50_p2 = pnand %p48_p1, %p45_p0 }
   0x7   :  { %53 = shalt.err (!%p50_p2)
}
   0x8   :  { %s54_s15 = scalar_lea.vmem %s15_s7, 256  ;;  %p59_p4 = scmp.lt.s32.totalorder %s15_s7, %s15_s7 }
   0x9   :  { %p55_p3 = scmp.ne.s32.totalorder %s15_s7, %s54_s15  ;;  %p60_p5 = scmp.lt.s32.totalorder %s54_s15, %s54_s15 }
   0xb   :  { %p61_p6 = por %p60_p5, %p59_p4 }
   0xd   :  { %p62_p7 = pnand %p61_p6, %p55_p3 }
   0xf   :  { %65 = shalt.err (!%p62_p7)
}
  0x10   :  { %17 = dma.hbm_to_vmem [thread:$0]  %s128_s0, 256, %s15_s7, [#allocation3]  }
  0x11   :  { %88 = dma.done.wait [#allocation3], 256  }
  0x12   :  { %89 = vsyncadd [#allocation3], 4294967040  ;;  %s93_s18 = smov [#allocation5]   ;;  %v21_v0 = vld [vmem:[#allocation2] sm:$0xff]  ;;  %v22_v1 = vld [vmem:[#allocation2 + $0x8] sm:$0xff] }
  0x13   :  { %s33_s19 = sshll.u32 %s93_s18, 4  ;;  %v23_v2 = vmul.f32 %v21_v0, %v21_v0  ;;  %v24_v3 = vmul.f32 %v22_v1, %v22_v1  ;;  %s34_s19 = int_to_ptr.vmem [resolvable:$true] %s33_s19 }
  0x14   :  { %s66_s20 = scalar_lea.vmem %s34_s19, 256  ;;  %p71_p9 = scmp.lt.s32.totalorder %s34_s19, %s34_s19 }
  0x15   :  { %25 = vst [vmem:[#allocation5] sm:$0xff] %v23_v2  ;;  %26 = vst [vmem:[#allocation5 + $0x8] sm:$0xff] %v24_v3  ;;  %p67_p8 = scmp.ne.s32.totalorder %s34_s19, %s66_s20  ;;  %p72_p10 = scmp.lt.s32.totalorder %s66_s20, %s66_s20 }
  0x17   :  { %p73_p11 = por %p72_p10, %p71_p9 }
  0x19   :  { %p74_p12 = pnand %p73_p11, %p67_p8 }
  0x1b   :  { %77 = shalt.err (!%p74_p12)
}
  0x1c   :  { %s78_s22 = scalar_lea.hbm %s129_s1, 256 }
  0x1d   :  { %p79_p13 = scmp.ne.s32.totalorder %s129_s1, %s78_s22  ;;  %p82_p0 = scmp.lt.u32.totalorder %s78_s22, %s129_s1 }
  0x1f   :  { %p84_p1 = pnand %p82_p0, %p79_p13 }
  0x21   :  { %87 = shalt.err (!%p84_p1)
}
  0x22   :  { %36 = dma.vmem_to_hbm [thread:$0]  %s34_s19, 256, %s129_s1, [#allocation4]  }
  0x23   :  { %90 = dma.done.wait [#allocation4], 256  }
  0x24   :  { %91 = vsyncadd [#allocation4], 4294967040 }
  0x25   :  { %40 = vsyncpa [#allocation3], 1 }
  0x26   :  { %41 = vsyncpa [#allocation4], 1 }

</bundles_post_ra>
